<compile_context>
chip_gen: v5e
topology: v5e:2x2
jax: 0.10.0
libtpu: 0.0.40
codegen_flags: <defaults>
</compile_context>

<pallas_src>
import functools

import jax
import jax.numpy as jnp
from jax import lax
from jax.experimental import pallas as pl
from jax.experimental.pallas import tpu as pltpu


def _round_up(x: int, m: int) -> int:
    return ((x + m - 1) // m) * m


def _linear_sigmoid_kernel(x_ref, w_ref, b_ref, o_ref, acc_ref):
    # x_ref: (tm, tk)  w_ref: (tn, tk)  b_ref: (1, tn)  o_ref: (tm, tn)
    k = pl.program_id(2)

    @pl.when(k == 0)
    def _():
        acc_ref[...] = jnp.zeros_like(acc_ref)

    # Contract over IN (axis 1 of both operands): (tm, tk) x (tn, tk) -> (tm, tn)
    acc_ref[...] += lax.dot_general(
        x_ref[...],
        w_ref[...],
        dimension_numbers=(((1,), (1,)), ((), ())),
        preferred_element_type=jnp.float32,
    )

    @pl.when(k == pl.num_programs(2) - 1)
    def _():
        z = acc_ref[...] + b_ref[...]          # bias broadcast over batch rows
        o_ref[...] = jax.nn.sigmoid(z).astype(o_ref.dtype)


@functools.partial(jax.jit, static_argnames=())
def linear_sigmoid(x, weight, bias):
    """y = sigmoid(x @ weight.T + bias), matching nn.Linear + nn.Sigmoid.

    x:      (B, IN)        float32
    weight: (OUT, IN)      PyTorch convention (NOT transposed in the wrapper)
    bias:   (OUT,)
    """
    B, IN = x.shape
    OUT, IN_w = weight.shape
    assert IN == IN_w

    # --- choose tiles and pad to lane/sublane-dense shapes -------------------
    tm = min(128, _round_up(B, 8))
    tn = min(512, _round_up(OUT, 128))
    tk = min(512, _round_up(IN, 128))

    B_pad = _round_up(B, tm)
    OUT_pad = _round_up(OUT, tn)
    IN_pad = _round_up(IN, tk)

    x_p = jnp.pad(x, ((0, B_pad - B), (0, IN_pad - IN)))
    w_p = jnp.pad(weight, ((0, OUT_pad - OUT), (0, IN_pad - IN)))
    b_p = jnp.pad(bias, (0, OUT_pad - OUT)).reshape(1, OUT_pad)

    grid = (B_pad // tm, OUT_pad // tn, IN_pad // tk)

    y_pad = pl.pallas_call(
        _linear_sigmoid_kernel,
        out_shape=jax.ShapeDtypeStruct((B_pad, OUT_pad), x.dtype),
        grid_spec=pltpu.PrefetchScalarGridSpec(
            num_scalar_prefetch=0,
            grid=grid,
            in_specs=[
                pl.BlockSpec((tm, tk), lambda i, j, k: (i, k)),   # x tile
                pl.BlockSpec((tn, tk), lambda i, j, k: (j, k)),   # weight tile [OUT, IN]
                pl.BlockSpec((1, tn), lambda i, j, k: (0, j)),    # bias tile
            ],
            out_specs=pl.BlockSpec((tm, tn), lambda i, j, k: (i, j)),
            scratch_shapes=[pltpu.VMEM((tm, tn), jnp.float32)],
        ),
        compiler_params=pltpu.CompilerParams(
            dimension_semantics=("parallel", "parallel", "arbitrary"),
        ),
    )(x_p, w_p, b_p)

    return y_pad[:B, :OUT]


if __name__ == "__main__":
    key = jax.random.PRNGKey(0)
    kx, kw, kb = jax.random.split(key, 3)

    B, IN, OUT = 2, 10, 16
    x = jax.random.normal(kx, (B, IN), dtype=jnp.float32)

    # Deterministic parameter init (mimics nn.Linear's uniform(-1/sqrt(in), 1/sqrt(in)))
    bound = 1.0 / jnp.sqrt(jnp.float32(IN))
    weight = jax.random.uniform(kw, (OUT, IN), minval=-bound, maxval=bound,
                                dtype=jnp.float32)
    bias = jax.random.uniform(kb, (OUT,), minval=-bound, maxval=bound,
                              dtype=jnp.float32)

    y = linear_sigmoid(x, weight, bias)
    jax.block_until_ready(y)

    # Reference check in plain JAX
    y_ref = jax.nn.sigmoid(x @ weight.T + bias)
    assert y.shape == (B, OUT)
    assert jnp.allclose(y, y_ref, atol=1e-5), "mismatch vs reference"

    print("KERNEL_OK")
</pallas_src>

<mosaic_0001>
module attributes {stable_mosaic.version = 11 : i64} {
  func.func @_linear_sigmoid_kernel(%arg0: i32, %arg1: i32, %arg2: i32, %arg3: memref<8x128xf32, #tpu.memory_space<vmem>>, %arg4: memref<128x128xf32, #tpu.memory_space<vmem>>, %arg5: memref<1x128xf32, #tpu.memory_space<vmem>>, %arg6: memref<8x128xf32, #tpu.memory_space<vmem>>, %arg7: memref<8x128xf32, #tpu.memory_space<vmem>>) attributes {dimension_semantics = [#tpu.dimension_semantics<parallel>, #tpu.dimension_semantics<parallel>, #tpu.dimension_semantics<arbitrary>], iteration_bounds = array<i64: 1, 1, 1>, scalar_prefetch = 0 : i64, scratch_operands = 1 : i64, tpu.core_type = #tpu.core_type<tc>, window_params = [{transform_indices = @transform_0, window_bounds = array<i64: 8, 128>}, {transform_indices = @transform_1, window_bounds = array<i64: 128, 128>}, {transform_indices = @transform_2, window_bounds = array<i64: 1, 128>}, {transform_indices = @transform_3, window_bounds = array<i64: 8, 128>}]} {
    %c0_i32 = arith.constant 0 : i32
    %0 = arith.cmpi eq, %arg2, %c0_i32 : i32
    %1 = arith.extui %0 : i1 to i32
    %c0_i32_0 = arith.constant 0 : i32
    %2 = arith.cmpi ne, %1, %c0_i32_0 : i32
    scf.if %2 {
      %cst_10 = arith.constant 0.000000e+00 : f32
      %12 = vector.broadcast %cst_10 : f32 to vector<8x128xf32>
      %c0_11 = arith.constant 0 : index
      %c0_12 = arith.constant 0 : index
      %13 = vector.load %arg7[%c0_11, %c0_12] : memref<8x128xf32, #tpu.memory_space<vmem>>, vector<8x128xf32>
      tpu.vector_store %arg7[%c0_11, %c0_12], %12 {strides = array<i32>} : memref<8x128xf32, #tpu.memory_space<vmem>>, vector<8x128xf32>,
    } else {
    }
    %c0 = arith.constant 0 : index
    %c0_1 = arith.constant 0 : index
    %3 = vector.load %arg7[%c0, %c0_1] : memref<8x128xf32, #tpu.memory_space<vmem>>, vector<8x128xf32>
    %c0_2 = arith.constant 0 : index
    %c0_3 = arith.constant 0 : index
    %4 = vector.load %arg3[%c0_2, %c0_3] : memref<8x128xf32, #tpu.memory_space<vmem>>, vector<8x128xf32>
    %c0_4 = arith.constant 0 : index
    %c0_5 = arith.constant 0 : index
    %5 = vector.load %arg4[%c0_4, %c0_5] : memref<128x128xf32, #tpu.memory_space<vmem>>, vector<128x128xf32>
    %cst = arith.constant dense<0.000000e+00> : vector<8x128xf32>
    %6 = tpu.matmul %4, %5, %cst {dimension_numbers = #tpu.dot_dimension_numbers<[1], [1], [0], [0], [0, 0, 1, 0], [], []>} : vector<8x128xf32>, vector<128x128xf32>, vector<8x128xf32> -> vector<8x128xf32>
    %7 = arith.addf %3, %6 : vector<8x128xf32>
    %c0_6 = arith.constant 0 : index
    %c0_7 = arith.constant 0 : index
    %8 = vector.load %arg7[%c0_6, %c0_7] : memref<8x128xf32, #tpu.memory_space<vmem>>, vector<8x128xf32>
    tpu.vector_store %arg7[%c0_6, %c0_7], %7 {strides = array<i32>} : memref<8x128xf32, #tpu.memory_space<vmem>>, vector<8x128xf32>,
    %c0_i32_8 = arith.constant 0 : i32
    %9 = arith.cmpi eq, %arg2, %c0_i32_8 : i32
    %10 = arith.extui %9 : i1 to i32
    %c0_i32_9 = arith.constant 0 : i32
    %11 = arith.cmpi ne, %10, %c0_i32_9 : i32
    scf.if %11 {
      %c0_10 = arith.constant 0 : index
      %c0_11 = arith.constant 0 : index
      %12 = vector.load %arg7[%c0_10, %c0_11] : memref<8x128xf32, #tpu.memory_space<vmem>>, vector<8x128xf32>
      %c0_12 = arith.constant 0 : index
      %c0_13 = arith.constant 0 : index
      %13 = vector.load %arg5[%c0_12, %c0_13] : memref<1x128xf32, #tpu.memory_space<vmem>>, vector<1x128xf32>
      %14 = vector.broadcast %13 : vector<1x128xf32> to vector<8x128xf32>
      %15 = arith.addf %12, %14 : vector<8x128xf32>
      %16 = arith.negf %15 : vector<8x128xf32>
      %17 = math.exp %16 : vector<8x128xf32>
      %cst_14 = arith.constant 1.000000e+00 : f32
      %18 = vector.broadcast %cst_14 : f32 to vector<8x128xf32>
      %19 = arith.addf %18, %17 : vector<8x128xf32>
      %20 = arith.divf %18, %19 : vector<8x128xf32>
      %c0_15 = arith.constant 0 : index
      %c0_16 = arith.constant 0 : index
      %21 = vector.load %arg6[%c0_15, %c0_16] : memref<8x128xf32, #tpu.memory_space<vmem>>, vector<8x128xf32>
      tpu.vector_store %arg6[%c0_15, %c0_16], %20 {strides = array<i32>} : memref<8x128xf32, #tpu.memory_space<vmem>>, vector<8x128xf32>,
    } else {
    }
    return
  }
  func.func @transform_0(%arg0: i32, %arg1: i32, %arg2: i32) -> (i32, i32) {
    %c0_i32 = arith.constant 0 : i32
    return %arg0, %arg2 : i32, i32
  }
  func.func @transform_1(%arg0: i32, %arg1: i32, %arg2: i32) -> (i32, i32) {
    %c0_i32 = arith.constant 0 : i32
    return %arg1, %arg2 : i32, i32
  }
  func.func @transform_2(%arg0: i32, %arg1: i32, %arg2: i32) -> (i32, i32) {
    %c0_i32 = arith.constant 0 : i32
    %c0_i32_0 = arith.constant 0 : i32
    return %c0_i32, %arg1 : i32, i32
  }
  func.func @transform_3(%arg0: i32, %arg1: i32, %arg2: i32) -> (i32, i32) {
    %c0_i32 = arith.constant 0 : i32
    return %arg0, %arg1 : i32, i32
  }
}

</mosaic_0001>

<bundles_post_ra>
// kernel: linear_sigmoid.1
= control target key start
LH: loop header
LB: loop body
LE: loop exit
PB: predicated region body
PF: predicated region fallthrough
CT: control target
= control target key end

     0   :  { %s175_s1 = inlined_call_operand.vmem [shape: f32[128,128], index: 1, kind: input, shape index: {}]   ;;  %s176_s2 = inlined_call_operand.vmem [shape: f32[1,128], index: 2, kind: input, shape index: {}]   ;;  %s177_s0 = inlined_call_operand.vmem [shape: f32[8,128], index: 0, kind: input, shape index: {}]   ;;  %s178_s3 = inlined_call_operand.vmem [shape: f32[8,128], index: 3, kind: output, shape index: {}]  }
   0x1   :  { %v36_v0 = vld [vmem:[%s175_s1 + $0x78] sm:$0xff]  ;;  %v35_v1 = vld [vmem:[%s175_s1 + $0x70] sm:$0xff]  ;;  %v34_v2 = vld [vmem:[%s175_s1 + $0x68] sm:$0xff] }
   0x2   :  { %37 = vmatpush.xpose.msra.mxu0 %v36_v0  ;;  %v33_v3 = vld [vmem:[%s175_s1 + $0x60] sm:$0xff]  ;;  %v32_v4 = vld [vmem:[%s175_s1 + $0x58] sm:$0xff]  ;;  %v31_v5 = vld [vmem:[%s175_s1 + $0x50] sm:$0xff] }
   0x3   :  { %v30_v6 = vld [vmem:[%s175_s1 + $0x48] sm:$0xff]  ;;  %v29_v7 = vld [vmem:[%s175_s1 + $0x40] sm:$0xff]  ;;  %v28_v8 = vld [vmem:[%s175_s1 + $0x38] sm:$0xff] }
   0x4   :  { %v27_v9 = vld [vmem:[%s175_s1 + $0x30] sm:$0xff]  ;;  %v26_v10 = vld [vmem:[%s175_s1 + $0x28] sm:$0xff]  ;;  %v25_v11 = vld [vmem:[%s175_s1 + $0x20] sm:$0xff] }
   0x5   :  { %v24_v12 = vld [vmem:[%s175_s1 + $0x18] sm:$0xff]  ;;  %v23_v13 = vld [vmem:[%s175_s1 + $0x10] sm:$0xff]  ;;  %v22_v14 = vld [vmem:[%s175_s1 + $0x8] sm:$0xff] }
   0x6   :  { %38 = vmatpush.xpose.msra.mxu0 %v35_v1  ;;  %v21_v15 = vld [vmem:[%s175_s1] sm:$0xff] }
   0x7   :  { %v20_v16 = vld [vmem:[%s177_s0] sm:$0xff] }
   0x8   :  { %v93_v17 = vld [vmem:[%s176_s2] ss:$0 sm:$0xff] }
   0xa   :  { %39 = vmatpush.xpose.msra.mxu0 %v34_v2 }
   0xe   :  { %40 = vmatpush.xpose.msra.mxu0 %v33_v3 }
  0x12   :  { %41 = vmatpush.xpose.msra.mxu0 %v32_v4 }
  0x16   :  { %42 = vmatpush.xpose.msra.mxu0 %v31_v5 }
  0x1a   :  { %43 = vmatpush.xpose.msra.mxu0 %v30_v6 }
  0x1e   :  { %44 = vmatpush.xpose.msra.mxu0 %v29_v7 }
  0x22   :  { %45 = vmatpush.xpose.msra.mxu0 %v28_v8 }
  0x26   :  { %46 = vmatpush.xpose.msra.mxu0 %v27_v9 }
  0x2a   :  { %47 = vmatpush.xpose.msra.mxu0 %v26_v10 }
  0x2e   :  { %48 = vmatpush.xpose.msra.mxu0 %v25_v11 }
  0x32   :  { %49 = vmatpush.xpose.msra.mxu0 %v24_v12 }
  0x36   :  { %50 = vmatpush.xpose.msra.mxu0 %v23_v13 }
  0x3a   :  { %51 = vmatpush.xpose.msra.mxu0 %v22_v14 }
  0x3e   :  { %52 = vmatpush.xpose.msra.mxu0 %v21_v15 }
  0x41   :  { %53 = vmatmul.f32.vlgmr.msra.gmra.mxu0 %v20_v16 }
  0xbe   :  { %v54_v18 = vpop.f32.mrf.mxu0 }
  0xbf   :  { %v67_v19 = vadd.f32 %v93_v17, %v54_v18 }
  0xc1   :  { %v92_v20 = vmul.f32 -1.442695, %v67_v19 }
  0xc3   :  { %94 = vpow2.f32 %v92_v20 }
  0xc9   :  { %v95_v21 = vpop.eup %94 }
  0xca   :  { %v71_v22 = vadd.f32 1.0, %v95_v21 }
  0xcc   :  { %96 = vrcp.f32 %v71_v22  ;;  %v83_v26 = vand.u32 2147483648, %v71_v22  ;;  %v81_v28 = vand.u32 2147483647, %v71_v22  ;;  %vm77_vm1 = vweird.f32 %v71_v22 }
  0xce   :  { %v84_v30 = vor.u32 1.1754944e-38, %v83_v26  ;;  %vm82_vm3 = vcmp.eq.f32.partialorder %v81_v28, 8.507059e+37 }
  0xd2   :  { %v97_v23 = vpop.eup %96 }
  0xd3   :  { %v73_v24 = vmul.f32 %v97_v23, %v71_v22  ;;  %vm78_vm0 = vweird.f32 %v97_v23 }
  0xd4   :  { %vm79_vm2 = vmor %vm77_vm1, %vm78_vm0 }
  0xd5   :  { %v74_v25 = vsub.f32 1.0, %v73_v24 }
  0xd7   :  { %v75_v27 = vmul.f32 %v97_v23, %v74_v25 }
  0xd9   :  { %v76_v29 = vadd.f32 %v97_v23, %v75_v27 }
  0xdb   :  { %v80_v31 = vsel %vm79_vm2, %v97_v23, %v76_v29 }
  0xdc   :  { %v85_v32 = vsel %vm82_vm3, %v84_v30, %v80_v31 }
  0xdd   :  { %87 = vst [vmem:[%s178_s3] sm:$0xff] %v85_v32 }

</bundles_post_ra>
